<compile_context>
chip_gen: v5e
topology: v5e:2x2
jax: 0.10.0
libtpu: 0.0.40
codegen_flags: <defaults>
</compile_context>

<pallas_src>
import jax
import jax.numpy as jnp
from jax.experimental import pallas as pl
from jax.experimental.pallas import tpu as pltpu

HIDDEN1 = 400
HIDDEN2 = 200
H1_PAD = 512              # HIDDEN1 rounded up to a 128-lane boundary


def _ceil_to(x, m):
    return ((x + m - 1) // m) * m


def critic_kernel(sa_ref, wf_ref, b1_ref, w2s_ref, b2_ref, w3_ref, b3_ref,
                  out_ref):
    # bf16 operands for the MXU; accumulation stays f32.
    sa_bf = sa_ref[...].astype(jnp.bfloat16)

    # Fused small-K matmul: [s, a] @ blockdiag(W1, W2a) -> (tb, H1_PAD+200).
    #   columns [0, 400)      : s @ W1          (layer-1 pre-activation)
    #   columns [512, 712)    : a @ W2a         (action term of layer 2)
    h = jnp.dot(sa_bf, wf_ref[...], preferred_element_type=jnp.float32)

    # Layer 1: bias + ReLU in f32 (v5e-safe VPU path).
    l1 = jnp.maximum(h[:, :HIDDEN1] + b1_ref[...], 0.0)

    # Layer 2: l1 @ W2s (the real MXU work) + action term + bias, then ReLU.
    a_term = h[:, H1_PAD:]                      # lane-aligned slice (start 512)
    l2 = (jnp.dot(l1.astype(jnp.bfloat16), w2s_ref[...],
                  preferred_element_type=jnp.float32)
          + a_term + b2_ref[...])
    l2 = jnp.maximum(l2, 0.0)

    # Output layer: Linear(200 -> 1) as VPU multiply + lane reduction
    # (avoids a width-1 MXU matmul).  b3 is a scalar read from SMEM.
    out = jnp.sum(l2 * w3_ref[...], axis=-1, keepdims=True) + b3_ref[0, 0]
    out_ref[...] = out.astype(out_ref.dtype)


def critic_forward(s, a, params, *, tb=None):
    """Critic forward pass as one pipelined Pallas call, tiled over batch."""
    B, state_size = s.shape
    action_size = a.shape[1]
    sa_dim = state_size + action_size
    w_fused, b1, w2s, b2, w3, b3 = params

    # Single merged input stream (both halves share one 128-lane tile anyway).
    sa = jnp.concatenate([s, a], axis=1)

    # Batch tile: multiple of 8 sublanes, capped at 1024; aim for >=2 grid
    # steps so v7x's two TensorCores both get work ("parallel" batch axis).
    if tb is None:
        tb = min(1024, max(8, _ceil_to(-(-B // 2), 8)))
    else:
        tb = max(8, _ceil_to(tb, 8))
    b_pad = _ceil_to(B, tb)
    if b_pad != B:
        sa = jnp.pad(sa, ((0, b_pad - B), (0, 0)))

    grid = (b_pad // tb,)
    const2 = lambda i: (0, 0)   # weights/biases: resident, DMA'd once

    # Advisory cost hint for XLA's scheduler around the custom call.
    flops = 2 * b_pad * (sa_dim * (H1_PAD + HIDDEN2)
                         + HIDDEN1 * HIDDEN2 + HIDDEN2)
    bytes_accessed = (sa.size * 4 + b_pad * 4
                      + sum(int(p.size) * p.dtype.itemsize for p in params))

    out = pl.pallas_call(
        critic_kernel,
        out_shape=jax.ShapeDtypeStruct((b_pad, 1), jnp.float32),
        grid=grid,
        in_specs=[
            pl.BlockSpec((tb, sa_dim), lambda i: (i, 0)),       # [s, a] tiled
            pl.BlockSpec(w_fused.shape, const2),                # blockdiag(W1, W2a)
            pl.BlockSpec(b1.shape, const2),                     # b1 (1, 400)
            pl.BlockSpec(w2s.shape, const2),                    # W2s (400, 200)
            pl.BlockSpec(b2.shape, const2),                     # b2 (1, 200)
            pl.BlockSpec(w3.shape, const2),                     # w3 row (1, 200)
            pl.BlockSpec(memory_space=pltpu.MemorySpace.SMEM),  # b3 scalar
        ],
        out_specs=pl.BlockSpec((tb, 1), lambda i: (i, 0)),
        compiler_params=pltpu.CompilerParams(
            dimension_semantics=("parallel",),
            vmem_limit_bytes=32 * 1024 * 1024),                 # v5e-safe headroom
        cost_estimate=pl.CostEstimate(flops=flops, transcendentals=0,
                                      bytes_accessed=bytes_accessed),
    )(sa, w_fused, b1, w2s, b2, w3, b3)
    # Padded batch rows carry garbage (ReLU(b1) flows through) -- always slice.
    return out[:B]


def init_params(key, state_size, action_size):
    """PyTorch-nn.Linear-style init (uniform(-1/sqrt(fan_in), 1/sqrt(fan_in))).

    Weights stored [in, out].  W1 and W2's action rows are packed into one
    block-diagonal bf16 matrix (MXU fast path); W2's l1 rows stay a separate
    bf16 matmul weight; the VPU-path output weight / biases stay f32."""
    ks = jax.random.split(key, 6)

    def unif(k, shape, fan_in):
        bound = 1.0 / (float(fan_in) ** 0.5)
        return jax.random.uniform(k, shape, jnp.float32, -bound, bound)

    w1 = unif(ks[0], (state_size, HIDDEN1), state_size)
    b1 = unif(ks[1], (1, HIDDEN1), state_size)

    fan_in2 = HIDDEN1 + action_size
    w2_full = unif(ks[2], (fan_in2, HIDDEN2), fan_in2)
    b2 = unif(ks[3], (1, HIDDEN2), fan_in2)
    w2s = w2_full[:HIDDEN1].astype(jnp.bfloat16)   # multiplies l1
    w2a = w2_full[HIDDEN1:]                        # multiplies a (fused below)

    # Fused block-diagonal weight: [s, a] @ W_fused gives s@W1 in cols [0,400)
    # and a@W2a in cols [512,712); the gap keeps the second slice lane-aligned.
    sa_dim = state_size + action_size
    w_fused = jnp.zeros((sa_dim, H1_PAD + HIDDEN2), jnp.float32)
    w_fused = w_fused.at[:state_size, :HIDDEN1].set(w1)
    w_fused = w_fused.at[state_size:, H1_PAD:].set(w2a)
    w_fused = w_fused.astype(jnp.bfloat16)

    w3 = unif(ks[4], (1, HIDDEN2), HIDDEN2)        # row form for VPU reduction
    b3 = unif(ks[5], (1, 1), HIDDEN2)              # scalar, lives in SMEM
    return (w_fused, b1, w2s, b2, w3, b3)


def reference_forward(s, a, params):
    """Pure-JAX reference using the same bf16-operand / f32-accumulate math."""
    w_fused, b1, w2s, b2, w3, b3 = params
    sa = jnp.concatenate([s, a], axis=1).astype(jnp.bfloat16)
    h = jnp.dot(sa, w_fused, preferred_element_type=jnp.float32)
    l1 = jnp.maximum(h[:, :HIDDEN1] + b1, 0.0)
    l2 = jnp.maximum(
        jnp.dot(l1.astype(jnp.bfloat16), w2s,
                preferred_element_type=jnp.float32)
        + h[:, H1_PAD:] + b2, 0.0)
    return jnp.sum(l2 * w3, axis=-1, keepdims=True) + b3


if __name__ == "__main__":
    batch = 2
    state_size = 8
    action_size = 4

    key = jax.random.PRNGKey(0)
    k_s, k_a, k_p = jax.random.split(key, 3)
    s = jax.random.normal(k_s, (batch, state_size), jnp.float32)
    a = jax.random.normal(k_a, (batch, action_size), jnp.float32)
    params = init_params(k_p, state_size, action_size)

    out = jax.block_until_ready(critic_forward(s, a, params))
    ref = reference_forward(s, a, params)

    assert out.shape == (batch, 1)
    assert jnp.allclose(out, ref, atol=2e-3, rtol=2e-3), (out, ref)

    print("KERNEL_OK")
</pallas_src>

<mosaic_0001>
module attributes {stable_mosaic.version = 11 : i64} {
  func.func @critic_kernel(%arg0: i32, %arg1: memref<8x12xf32, #tpu.memory_space<vmem>>, %arg2: memref<12x712xbf16, #tpu.memory_space<vmem>>, %arg3: memref<1x400xf32, #tpu.memory_space<vmem>>, %arg4: memref<400x200xbf16, #tpu.memory_space<vmem>>, %arg5: memref<1x200xf32, #tpu.memory_space<vmem>>, %arg6: memref<1x200xf32, #tpu.memory_space<vmem>>, %arg7: memref<1x1xf32, #tpu.memory_space<smem>>, %arg8: memref<8x1xf32, #tpu.memory_space<vmem>>) attributes {dimension_semantics = [#tpu.dimension_semantics<parallel>], iteration_bounds = array<i64: 1>, scalar_prefetch = 0 : i64, scratch_operands = 0 : i64, tpu.core_type = #tpu.core_type<tc>, window_params = [{transform_indices = @transform_0, window_bounds = array<i64: 8, 12>}, {pipeline_mode = #tpu.pipeline_mode<synchronous>, transform_indices = @transform_1, window_bounds = array<i64: 12, 712>}, {pipeline_mode = #tpu.pipeline_mode<synchronous>, transform_indices = @transform_2, window_bounds = array<i64: 1, 400>}, {pipeline_mode = #tpu.pipeline_mode<synchronous>, transform_indices = @transform_3, window_bounds = array<i64: 400, 200>}, {pipeline_mode = #tpu.pipeline_mode<synchronous>, transform_indices = @transform_4, window_bounds = array<i64: 1, 200>}, {pipeline_mode = #tpu.pipeline_mode<synchronous>, transform_indices = @transform_5, window_bounds = array<i64: 1, 200>}, {transform_indices = @transform_6, window_bounds = array<i64: 1, 1>}, {transform_indices = @transform_7, window_bounds = array<i64: 8, 1>}]} {
    %c0 = arith.constant 0 : index
    %c0_0 = arith.constant 0 : index
    %0 = vector.load %arg1[%c0, %c0_0] : memref<8x12xf32, #tpu.memory_space<vmem>>, vector<8x12xf32>
    %1 = arith.truncf %0 : vector<8x12xf32> to vector<8x12xbf16>
    %c0_1 = arith.constant 0 : index
    %c0_2 = arith.constant 0 : index
    %2 = vector.load %arg2[%c0_1, %c0_2] : memref<12x712xbf16, #tpu.memory_space<vmem>>, vector<12x712xbf16>
    %cst = arith.constant dense<0.000000e+00> : vector<8x712xf32>
    %3 = tpu.matmul %1, %2, %cst {dimension_numbers = #tpu.dot_dimension_numbers<[1], [0], [0], [1], [0, 0, 1, 1], [], []>} : vector<8x12xbf16>, vector<12x712xbf16>, vector<8x712xf32> -> vector<8x712xf32>
    %4 = vector.extract_strided_slice %3 {offsets = [0, 0], sizes = [8, 400], strides = [1, 1]} : vector<8x712xf32> to vector<8x400xf32>
    %c0_3 = arith.constant 0 : index
    %c0_4 = arith.constant 0 : index
    %5 = vector.load %arg3[%c0_3, %c0_4] : memref<1x400xf32, #tpu.memory_space<vmem>>, vector<1x400xf32>
    %6 = vector.broadcast %5 : vector<1x400xf32> to vector<8x400xf32>
    %7 = arith.addf %4, %6 : vector<8x400xf32>
    %cst_5 = arith.constant 0.000000e+00 : f32
    %8 = vector.broadcast %cst_5 : f32 to vector<8x400xf32>
    %9 = arith.maximumf %7, %8 : vector<8x400xf32>
    %10 = vector.extract_strided_slice %3 {offsets = [0, 512], sizes = [8, 200], strides = [1, 1]} : vector<8x712xf32> to vector<8x200xf32>
    %11 = arith.truncf %9 : vector<8x400xf32> to vector<8x400xbf16>
    %c0_6 = arith.constant 0 : index
    %c0_7 = arith.constant 0 : index
    %12 = vector.load %arg4[%c0_6, %c0_7] : memref<400x200xbf16, #tpu.memory_space<vmem>>, vector<400x200xbf16>
    %cst_8 = arith.constant dense<0.000000e+00> : vector<8x200xf32>
    %13 = tpu.matmul %11, %12, %cst_8 {dimension_numbers = #tpu.dot_dimension_numbers<[1], [0], [0], [1], [0, 0, 1, 1], [], []>} : vector<8x400xbf16>, vector<400x200xbf16>, vector<8x200xf32> -> vector<8x200xf32>
    %14 = arith.addf %13, %10 : vector<8x200xf32>
    %c0_9 = arith.constant 0 : index
    %c0_10 = arith.constant 0 : index
    %15 = vector.load %arg5[%c0_9, %c0_10] : memref<1x200xf32, #tpu.memory_space<vmem>>, vector<1x200xf32>
    %16 = vector.broadcast %15 : vector<1x200xf32> to vector<8x200xf32>
    %17 = arith.addf %14, %16 : vector<8x200xf32>
    %cst_11 = arith.constant 0.000000e+00 : f32
    %18 = vector.broadcast %cst_11 : f32 to vector<8x200xf32>
    %19 = arith.maximumf %17, %18 : vector<8x200xf32>
    %c0_12 = arith.constant 0 : index
    %c0_13 = arith.constant 0 : index
    %20 = vector.load %arg6[%c0_12, %c0_13] : memref<1x200xf32, #tpu.memory_space<vmem>>, vector<1x200xf32>
    %21 = vector.broadcast %20 : vector<1x200xf32> to vector<8x200xf32>
    %22 = arith.mulf %19, %21 : vector<8x200xf32>
    %cst_14 = arith.constant dense<0.000000e+00> : vector<8xf32>
    %23 = vector.multi_reduction <add>, %22, %cst_14 [1] : vector<8x200xf32> to vector<8xf32>
    %24 = vector.shape_cast %23 : vector<8xf32> to vector<8x1xf32>
    %c0_15 = arith.constant 0 : index
    %c0_16 = arith.constant 0 : index
    %25 = memref.load %arg7[%c0_15, %c0_16] : memref<1x1xf32, #tpu.memory_space<smem>>
    %26 = vector.broadcast %25 : f32 to vector<8x1xf32>
    %27 = arith.addf %24, %26 : vector<8x1xf32>
    %c0_17 = arith.constant 0 : index
    %c0_18 = arith.constant 0 : index
    %28 = vector.load %arg8[%c0_17, %c0_18] : memref<8x1xf32, #tpu.memory_space<vmem>>, vector<8x1xf32>
    tpu.vector_store %arg8[%c0_17, %c0_18], %27 {strides = array<i32>} : memref<8x1xf32, #tpu.memory_space<vmem>>, vector<8x1xf32>,
    return
  }
  func.func @transform_0(%arg0: i32) -> (i32, i32) {
    %c0_i32 = arith.constant 0 : i32
    %c0_i32_0 = arith.constant 0 : i32
    return %arg0, %c0_i32 : i32, i32
  }
  func.func @transform_1(%arg0: i32) -> (i32, i32) {
    %c0_i32 = arith.constant 0 : i32
    %c0_i32_0 = arith.constant 0 : i32
    %c0_i32_1 = arith.constant 0 : i32
    return %c0_i32, %c0_i32_0 : i32, i32
  }
  func.func @transform_2(%arg0: i32) -> (i32, i32) {
    %c0_i32 = arith.constant 0 : i32
    %c0_i32_0 = arith.constant 0 : i32
    %c0_i32_1 = arith.constant 0 : i32
    return %c0_i32, %c0_i32_0 : i32, i32
  }
  func.func @transform_3(%arg0: i32) -> (i32, i32) {
    %c0_i32 = arith.constant 0 : i32
    %c0_i32_0 = arith.constant 0 : i32
    %c0_i32_1 = arith.constant 0 : i32
    return %c0_i32, %c0_i32_0 : i32, i32
  }
  func.func @transform_4(%arg0: i32) -> (i32, i32) {
    %c0_i32 = arith.constant 0 : i32
    %c0_i32_0 = arith.constant 0 : i32
    %c0_i32_1 = arith.constant 0 : i32
    return %c0_i32, %c0_i32_0 : i32, i32
  }
  func.func @transform_5(%arg0: i32) -> (i32, i32) {
    %c0_i32 = arith.constant 0 : i32
    %c0_i32_0 = arith.constant 0 : i32
    %c0_i32_1 = arith.constant 0 : i32
    return %c0_i32, %c0_i32_0 : i32, i32
  }
  func.func @transform_6(%arg0: i32) -> (i32, i32) {
    %c0_i32 = arith.constant 0 : i32
    %c0_i32_0 = arith.constant 0 : i32
    %c0_i32_1 = arith.constant 0 : i32
    return %c0_i32, %c0_i32_0 : i32, i32
  }
  func.func @transform_7(%arg0: i32) -> (i32, i32) {
    %c0_i32 = arith.constant 0 : i32
    %c0_i32_0 = arith.constant 0 : i32
    return %arg0, %c0_i32 : i32, i32
  }
}

</mosaic_0001>

<bundles_post_ra>
// kernel: tpu_custom_call.1
= control target key start
LH: loop header
LB: loop body
LE: loop exit
PB: predicated region body
PF: predicated region fallthrough
CT: control target
= control target key end

     0   :  { %13 = vsyncpa [#allocation4], 0  ;;  %s1175_s0 = inlined_call_operand.hbm [shape: f32[8,12], index: 0, kind: input, shape index: {}]   ;;  %s1176_s1 = inlined_call_operand.hbm [shape: bf16[12,712], index: 1, kind: input, shape index: {}]   ;;  %s1177_s2 = inlined_call_operand.hbm [shape: f32[1,400], index: 2, kind: input, shape index: {}]   ;;  %s1178_s3 = inlined_call_operand.hbm [shape: bf16[400,200], index: 3, kind: input, shape index: {}]   ;;  %s1179_s4 = inlined_call_operand.vmem [shape: f32[1,200], index: 4, kind: input, shape index: {}]   ;;  %s1180_s5 = inlined_call_operand.vmem [shape: f32[1,200], index: 5, kind: input, shape index: {}]   ;;  %s1181_s6 = inlined_call_operand.<no memory space> [shape: f32[1,1], index: 6, kind: input, shape index: {}]   ;;  %s1182_s7 = inlined_call_operand.vmem [shape: f32[8,1], index: 7, kind: output, shape index: {}]  }
   0x1   :  { %14 = vsyncpa [#allocation6], 0  ;;  %s31_s26 = sshll.u32 %s1176_s1, 4  ;;  %s32_s26 = int_to_ptr.hbm [resolvable:$true] %s31_s26 }
   0x2   :  { %15 = vsyncpa [#allocation9], 0  ;;  %s1083_s27 = smov [#allocation5]   ;;  %s21_s8 = sshll.u32 %s1175_s0, 4  ;;  %s22_s8 = int_to_ptr.hbm [resolvable:$true] %s21_s8 }
   0x3   :  { %s33_s28 = sshll.u32 %s1083_s27, 4  ;;  %s1084_s9 = smov 384   ;;  %s34_s28 = int_to_ptr.vmem [resolvable:$true] %s33_s28 }
   0x4   :  { %s1085_s10 = smov 24   ;;  %s1086_s11 = smov [#allocation3]  }
   0x5   :  { %39 = dma.hbm_to_vmem [thread:$0]  %s32_s26, 768, %s34_s28, [#allocation6], %s1084_s9, %s1084_s9, %s1085_s10  }
   0x6   :  { %s23_s12 = sshll.u32 %s1086_s11, 4  ;;  %s45_s15 = sshll.u32 %s1177_s2, 4  ;;  %s24_s12 = int_to_ptr.vmem [resolvable:$true] %s23_s12  ;;  %s46_s15 = int_to_ptr.hbm [resolvable:$true] %s45_s15 }
   0x7   :  { %26 = dma.hbm_to_vmem [thread:$0]  %s22_s8, 128, %s24_s12, [#allocation4]  }
   0x8   :  { %s55_s17 = sshll.u32 %s1178_s3, 4  ;;  %s1087_s18 = smov [#allocation7]   ;;  %s56_s17 = int_to_ptr.hbm [resolvable:$true] %s55_s17 }
   0x9   :  { %s47_s19 = sshll.u32 %s1087_s18, 4  ;;  %s1088_s0 = smov [#allocation8]   ;;  %s48_s19 = int_to_ptr.vmem [resolvable:$true] %s47_s19 }
   0xa   :  { %50 = dma.hbm_to_vmem [thread:$0]  %s46_s15, 64, %s48_s19, [#allocation6]  }
   0xb   :  { %s57_s20 = sshll.u32 %s1088_s0, 4  ;;  %s1089_s21 = smov 128   ;;  %s58_s20 = int_to_ptr.vmem [resolvable:$true] %s57_s20 }
   0xc   :  { %s1090_s22 = smov 8  }
   0xd   :  { %63 = dma.hbm_to_vmem [thread:$0]  %s56_s17, 6400, %s58_s20, [#allocation9], %s1089_s21, %s1089_s21, %s1090_s22  }
   0xe   :  { %1077 = dma.done.wait [#allocation4], 128  }
   0xf   :  { %1078 = vsyncadd [#allocation4], 4294967168 }
  0x10   :  { %1079 = dma.done.wait [#allocation6], 832  }
  0x11   :  { %1080 = vsyncadd [#allocation6], 4294966464 }
  0x12   :  { %1081 = dma.done.wait [#allocation9], 6400  }
  0x13   :  { %1082 = vsyncadd [#allocation9], 4294960896  ;;  %vm123_vm0 = vcmask 1045504   ;;  %v687_v0 = vld [vmem:[#allocation5] sm:$0xf]  ;;  %v87_v11 = vld [vmem:[#allocation3] sm:$0xff] }
  0x14   :  { %v920_v1 = vld [vmem:[#allocation5 + $0x14] sm:$0x30]  ;;  %v917_v2 = vld [vmem:[#allocation5 + $0x4] sm:$0xf]  ;;  %v689_v4 = vld [vmem:[#allocation5 + $0x18] sm:$0x30]  ;;  %v1144_v14 = vpack.c.bf16 %v87_v11, %v87_v11 }
  0x15   :  { %v688_v3 = vor.u32 %v920_v1, %v687_v0  ;;  %v695_v5 = vld [vmem:[#allocation5 + $0x8] sm:$0xf]  ;;  %v921_v6 = vld [vmem:[#allocation5 + $0x1c] sm:$0x30]  ;;  %v692_v7 = vor.u32 %v917_v2, %v689_v4  ;;  %v918_v9 = vld [vmem:[#allocation5 + $0xc] sm:$0xf] }
  0x16   :  { %v696_v8 = vor.u32 %v921_v6, %v695_v5  ;;  %v697_v10 = vld [vmem:[#allocation5 + $0x20] sm:$0x30]  ;;  %vm119_vm1 = vcmask 97280   ;;  %v938_v16 = vld [vmem:[#allocation8 + $0x74] sm:$0xf0]  ;;  %vm542_vm2 = vcmask 130048  }
  0x17   :  { %v125_v12 = vsel %vm123_vm0, %v688_v3, 0  ;;  %v700_v13 = vor.u32 %v918_v9, %v697_v10  ;;  %v773_v15 = vld [vmem:[#allocation8 + $0x70] sm:$0xf]  ;;  %v128_v17 = vsel %vm123_vm0, %v692_v7, 0  ;;  %v954_v21 = vld [vmem:[#allocation8 + $0xf4] sm:$0xf0] }
  0x18   :  { %149 = vmatpush.bf16.msra.mxu0 %v125_v12  ;;  %v131_v18 = vsel %vm123_vm0, %v696_v8, 0  ;;  %v774_v19 = vor.u32 %v938_v16, %v773_v15  ;;  %v837_v20 = vld [vmem:[#allocation8 + $0xf0] sm:$0xf]  ;;  %162 = vmatpush.bf16.msra.mxu1 %v128_v17  ;;  %v765_v24 = vld [vmem:[#allocation8 + $0x60] sm:$0xf]  ;;  %vm668_vm3 = vcmask 588800  }
  0x19   :  { %175 = vmatpush.bf16.msra.mxu2 %v131_v18  ;;  %v134_v22 = vsel %vm123_vm0, %v700_v13, 0  ;;  %v838_v23 = vor.u32 %v954_v21, %v837_v20  ;;  %v936_v25 = vld [vmem:[#allocation8 + $0x64] sm:$0xf0]  ;;  %v829_v27 = vld [vmem:[#allocation8 + $0xe0] sm:$0xf]  ;;  %vm676_vm4 = vcmask 7168  }
  0x1a   :  { %188 = vmatpush.bf16.msra.mxu3 %v134_v22  ;;  %v766_v26 = vor.u32 %v936_v25, %v765_v24  ;;  %v952_v28 = vld [vmem:[#allocation8 + $0xe4] sm:$0xf0]  ;;  %v757_v30 = vld [vmem:[#allocation8 + $0x50] sm:$0xf]  ;;  %v934_v31 = vld [vmem:[#allocation8 + $0x54] sm:$0xf0] }
  0x1b   :  { %709 = vmatmul.msk.bf16.vlgmr.msra.gmra.mxu0 %vm119_vm1, %v1144_v14  ;;  %v830_v29 = vor.u32 %v952_v28, %v829_v27  ;;  %710 = vmatmul.msk.bf16.vlgmr.msra.gmra.mxu1 %vm119_vm1, %v1144_v14  ;;  %v821_v32 = vld [vmem:[#allocation8 + $0xd0] sm:$0xf]  ;;  %v950_v33 = vld [vmem:[#allocation8 + $0xd4] sm:$0xf0]  ;;  %v749_v34 = vld [vmem:[#allocation8 + $0x40] sm:$0xf]  ;;  %v758_v35 = vor.u32 %v934_v31, %v757_v30 }
  0x1c   :  { %711 = vmatmul.msk.bf16.vlgmr.msra.gmra.mxu2 %vm119_vm1, %v1144_v14  ;;  %v932_v36 = vld [vmem:[#allocation8 + $0x44] sm:$0xf0]  ;;  %v813_v37 = vld [vmem:[#allocation8 + $0xc0] sm:$0xf]  ;;  %v703_v38 = vld [vmem:[#allocation5 + $0x10] sm:$0xf]  ;;  %v822_v39 = vor.u32 %v950_v33, %v821_v32 }
  0x1d   :  { %546 = vmatpush.bf16.msrb.mxu2 %v774_v19  ;;  %712 = vmatmul.msk.bf16.vlgmr.msra.gmra.mxu3 %vm119_vm1, %v1144_v14  ;;  %v922_v40 = vld [vmem:[#allocation5 + $0x24] sm:$0x30]  ;;  %v919_v41 = vld [vmem:[#allocation5 + $0x14] sm:$0xf]  ;;  %v705_v42 = vld [vmem:[#allocation5 + $0x28] sm:$0x30]  ;;  %v750_v49 = vor.u32 %v932_v36, %v749_v34 }
  0x1e   :  { %559 = vmatpush.bf16.msrb.mxu3 %v838_v23  ;;  %v948_v43 = vld [vmem:[#allocation8 + $0xc4] sm:$0xf0]  ;;  %v704_v44 = vor.u32 %v922_v40, %v703_v38  ;;  %v708_v45 = vor.u32 %v919_v41, %v705_v42  ;;  %v901_v46 = vld [vmem:[#allocation8 + $0x170] sm:$0xf]  ;;  %v970_v47 = vld [vmem:[#allocation8 + $0x174] sm:$0xf0] }
  0x1f   :  { %v902_v48 = vor.u32 %v970_v47, %v901_v46  ;;  %v893_v52 = vld [vmem:[#allocation8 + $0x160] sm:$0xf]  ;;  %v968_v53 = vld [vmem:[#allocation8 + $0x164] sm:$0xf0]  ;;  %v814_v54 = vor.u32 %v948_v43, %v813_v37  ;;  %v741_v55 = vld [vmem:[#allocation8 + $0x30] sm:$0xf] }
  0x20   :  { %v137_v50 = vsel %vm123_vm0, %v704_v44, 0  ;;  %v140_v51 = vsel %vm123_vm0, %v708_v45, 0  ;;  %v930_v56 = vld [vmem:[#allocation8 + $0x34] sm:$0xf0]  ;;  %v805_v57 = vld [vmem:[#allocation8 + $0xb0] sm:$0xf]  ;;  %v894_v59 = vor.u32 %v968_v53, %v893_v52 }
  0x21   :  { %547 = vmatpush.bf16.msrb.mxu2 %v766_v26  ;;  %201 = vmatpush.bf16.msrb.mxu0 %v137_v50  ;;  %v946_v58 = vld [vmem:[#allocation8 + $0xb4] sm:$0xf0]  ;;  %v885_v60 = vld [vmem:[#allocation8 + $0x150] sm:$0xf]  ;;  %v742_v62 = vor.u32 %v930_v56, %v741_v55  ;;  %v733_v0 = vld [vmem:[#allocation8 + $0x20] sm:$0xf] }
  0x22   :  { %560 = vmatpush.bf16.msrb.mxu3 %v830_v29  ;;  %214 = vmatpush.bf16.msrb.mxu1 %v140_v51  ;;  %v966_v61 = vld [vmem:[#allocation8 + $0x154] sm:$0xf0]  ;;  %v806_v63 = vor.u32 %v946_v58, %v805_v57  ;;  %v928_v1 = vld [vmem:[#allocation8 + $0x24] sm:$0xf0]  ;;  %v797_v2 = vld [vmem:[#allocation8 + $0xa0] sm:$0xf] }
  0x23   :  { %v944_v3 = vld [vmem:[#allocation8 + $0xa4] sm:$0xf0]  ;;  %v886_v4 = vor.u32 %v966_v61, %v885_v60  ;;  %v877_v5 = vld [vmem:[#allocation8 + $0x140] sm:$0xf]  ;;  %v734_v8 = vor.u32 %v928_v1, %v733_v0  ;;  %v725_v9 = vld [vmem:[#allocation8 + $0x10] sm:$0xf] }
  0x24   :  { %v964_v6 = vld [vmem:[#allocation8 + $0x144] sm:$0xf0]  ;;  %v909_v7 = vld [vmem:[#allocation8 + $0x180] sm:$0xf]  ;;  %v798_v11 = vor.u32 %v944_v3, %v797_v2  ;;  %v926_v12 = vld [vmem:[#allocation8 + $0x14] sm:$0xf0] }
  0x25   :  { %548 = vmatpush.bf16.msrb.mxu2 %v758_v35  ;;  %572 = vmatpush.bf16.msra.mxu0 %v902_v48  ;;  %v972_v10 = vld [vmem:[#allocation8 + $0x184] sm:$0xf0]  ;;  %v937_v15 = vld [vmem:[#allocation8 + $0x74] sm:$0xf]  ;;  %v775_v16 = vld [vmem:[#allocation8 + $0x78] sm:$0xf0]  ;;  %v878_v19 = vor.u32 %v964_v6, %v877_v5  ;;  %v726_v23 = vor.u32 %v926_v12, %v725_v9 }
  0x26   :  { %561 = vmatpush.bf16.msrb.mxu3 %v822_v39  ;;  %v910_v13 = vor.u32 %v972_v10, %v909_v7  ;;  %v789_v17 = vld [vmem:[#allocation8 + $0x90] sm:$0xf]  ;;  %v942_v18 = vld [vmem:[#allocation8 + $0x94] sm:$0xf0]  ;;  %v778_v20 = vor.u32 %v937_v15, %v775_v16  ;;  %v717_v25 = vld [vmem:[#allocation8] sm:$0xf] }
  0x27   :  { %v869_v21 = vld [vmem:[#allocation8 + $0x130] sm:$0xf]  ;;  %v962_v22 = vld [vmem:[#allocation8 + $0x134] sm:$0xf0]  ;;  %v790_v24 = vor.u32 %v942_v18, %v789_v17  ;;  %v924_v26 = vld [vmem:[#allocation8 + $0x4] sm:$0xf0] }
  0x28   :  { %592 = vmatpush.bf16.msra.mxu1 %v910_v13  ;;  %v781_v27 = vld [vmem:[#allocation8 + $0x80] sm:$0xf]  ;;  %v940_v28 = vld [vmem:[#allocation8 + $0x84] sm:$0xf0]  ;;  %v953_v29 = vld [vmem:[#allocation8 + $0xf4] sm:$0xf]  ;;  %v870_v31 = vor.u32 %v962_v22, %v869_v21  ;;  %v718_v33 = vor.u32 %v924_v26, %v717_v25 }
  0x29   :  { %549 = vmatpush.bf16.msrb.mxu2 %v750_v49  ;;  %573 = vmatpush.bf16.msra.mxu0 %v894_v59  ;;  %v839_v30 = vld [vmem:[#allocation8 + $0xf8] sm:$0xf0]  ;;  %v782_v34 = vor.u32 %v940_v28, %v781_v27  ;;  %v951_v37 = vld [vmem:[#allocation8 + $0xe4] sm:$0xf]  ;;  %v831_v38 = vld [vmem:[#allocation8 + $0xe8] sm:$0xf0] }
  0x2a   :  { %562 = vmatpush.bf16.msrb.mxu3 %v814_v54  ;;  %v903_v32 = vld [vmem:[#allocation8 + $0x178] sm:$0xf0]  ;;  %v842_v35 = vor.u32 %v953_v29, %v839_v30  ;;  %v967_v39 = vld [vmem:[#allocation8 + $0x164] sm:$0xf]  ;;  %v895_v40 = vld [vmem:[#allocation8 + $0x168] sm:$0xf0]  ;;  %v834_v41 = vor.u32 %v951_v37, %v831_v38 }
  0x2b   :  { %713 = vmatmul.msk.bf16.vlgmr.msrb.gmra.mxu0 %vm119_vm1, %v1144_v14  ;;  %714 = vmatmul.msk.bf16.vlgmr.msrb.gmra.mxu1 %vm119_vm1, %v1144_v14  ;;  %v969_v14 = vld [vmem:[#allocation8 + $0x174] sm:$0xf]  ;;  %v898_v42 = vor.u32 %v967_v39, %v895_v40  ;;  %v823_v44 = vld [vmem:[#allocation8 + $0xd8] sm:$0xf0]  ;;  %v861_v49 = vld [vmem:[#allocation8 + $0x120] sm:$0xf] }
  0x2c   :  { %598 = vmatpush.bf16.msrb.mxu1 %v778_v20  ;;  %v906_v36 = vor.u32 %v969_v14, %v903_v32  ;;  %v949_v43 = vld [vmem:[#allocation8 + $0xd4] sm:$0xf]  ;;  %v887_v47 = vld [vmem:[#allocation8 + $0x158] sm:$0xf0]  ;;  %v960_v50 = vld [vmem:[#allocation8 + $0x124] sm:$0xf0] }
  0x2d   :  { %550 = vmatpush.bf16.msrb.mxu2 %v742_v62  ;;  %574 = vmatpush.bf16.msra.mxu0 %v886_v4  ;;  %v965_v45 = vld [vmem:[#allocation8 + $0x154] sm:$0xf]  ;;  %v826_v46 = vor.u32 %v949_v43, %v823_v44  ;;  %v862_v51 = vor.u32 %v960_v50, %v861_v49  ;;  %v935_v52 = vld [vmem:[#allocation8 + $0x64] sm:$0xf]  ;;  %v767_v53 = vld [vmem:[#allocation8 + $0x68] sm:$0xf0] }
  0x2e   :  { %563 = vmatpush.bf16.msrb.mxu3 %v806_v63  ;;  %v890_v48 = vor.u32 %v965_v45, %v887_v47  ;;  %v770_v54 = vor.u32 %v935_v52, %v767_v53  ;;  %v947_v55 = vld [vmem:[#allocation8 + $0xc4] sm:$0xf]  ;;  %v815_v56 = vld [vmem:[#allocation8 + $0xc8] sm:$0xf0]  ;;  %v853_v61 = vld [vmem:[#allocation8 + $0x110] sm:$0xf] }
  0x2f   :  { %v963_v57 = vld [vmem:[#allocation8 + $0x144] sm:$0xf]  ;;  %v818_v58 = vor.u32 %v947_v55, %v815_v56  ;;  %v879_v59 = vld [vmem:[#allocation8 + $0x148] sm:$0xf0]  ;;  %v958_v62 = vld [vmem:[#allocation8 + $0x114] sm:$0xf0] }
  0x30   :  { %599 = vmatpush.bf16.msrb.mxu1 %v770_v54  ;;  %v882_v60 = vor.u32 %v963_v57, %v879_v59  ;;  %v933_v63 = vld [vmem:[#allocation8 + $0x54] sm:$0xf]  ;;  %v854_v0 = vor.u32 %v958_v62, %v853_v61  ;;  %v759_v1 = vld [vmem:[#allocation8 + $0x58] sm:$0xf0]  ;;  %v845_v9 = vld [vmem:[#allocation8 + $0x100] sm:$0xf] }
  0x31   :  { %551 = vmatpush.bf16.msrb.mxu2 %v734_v8  ;;  %575 = vmatpush.bf16.msra.mxu0 %v878_v19  ;;  %v762_v2 = vor.u32 %v933_v63, %v759_v1  ;;  %v945_v3 = vld [vmem:[#allocation8 + $0xb4] sm:$0xf]  ;;  %v807_v4 = vld [vmem:[#allocation8 + $0xb8] sm:$0xf0]  ;;  %v956_v10 = vld [vmem:[#allocation8 + $0x104] sm:$0xf0] }
  0x32   :  { %564 = vmatpush.bf16.msrb.mxu3 %v798_v11  ;;  %v810_v5 = vor.u32 %v945_v3, %v807_v4  ;;  %v961_v6 = vld [vmem:[#allocation8 + $0x134] sm:$0xf]  ;;  %v871_v7 = vld [vmem:[#allocation8 + $0x138] sm:$0xf0]  ;;  %v931_v11 = vld [vmem:[#allocation8 + $0x44] sm:$0xf]  ;;  %v846_v12 = vor.u32 %v956_v10, %v845_v9 }
  0x33   :  { %v874_v8 = vor.u32 %v961_v6, %v871_v7  ;;  %v751_v13 = vld [vmem:[#allocation8 + $0x48] sm:$0xf0]  ;;  %v943_v16 = vld [vmem:[#allocation8 + $0xa4] sm:$0xf]  ;;  %v929_v22 = vld [vmem:[#allocation8 + $0x34] sm:$0xf] }
  0x34   :  { %600 = vmatpush.bf16.msrb.mxu1 %v762_v2  ;;  %v754_v15 = vor.u32 %v931_v11, %v751_v13  ;;  %v799_v17 = vld [vmem:[#allocation8 + $0xa8] sm:$0xf0]  ;;  %v959_v18 = vld [vmem:[#allocation8 + $0x124] sm:$0xf]  ;;  %v941_v25 = vld [vmem:[#allocation8 + $0x94] sm:$0xf] }
  0x35   :  { %552 = vmatpush.bf16.msrb.mxu2 %v726_v23  ;;  %576 = vmatpush.bf16.msra.mxu0 %v870_v31  ;;  %v802_v19 = vor.u32 %v943_v16, %v799_v17  ;;  %v863_v20 = vld [vmem:[#allocation8 + $0x128] sm:$0xf0]  ;;  %v743_v23 = vld [vmem:[#allocation8 + $0x38] sm:$0xf0]  ;;  %v957_v27 = vld [vmem:[#allocation8 + $0x114] sm:$0xf] }
  0x36   :  { %565 = vmatpush.bf16.msrb.mxu3 %v790_v24  ;;  %v866_v21 = vor.u32 %v959_v18, %v863_v20  ;;  %v746_v24 = vor.u32 %v929_v22, %v743_v23  ;;  %v791_v26 = vld [vmem:[#allocation8 + $0x98] sm:$0xf0]  ;;  %v927_v30 = vld [vmem:[#allocation8 + $0x24] sm:$0xf]  ;;  %v735_v31 = vld [vmem:[#allocation8 + $0x28] sm:$0xf0] }
  0x37   :  { %v794_v28 = vor.u32 %v941_v25, %v791_v26  ;;  %v855_v29 = vld [vmem:[#allocation8 + $0x118] sm:$0xf0]  ;;  %v738_v32 = vor.u32 %v927_v30, %v735_v31  ;;  %v783_v37 = vld [vmem:[#allocation8 + $0x88] sm:$0xf0]  ;;  %v955_v38 = vld [vmem:[#allocation8 + $0x104] sm:$0xf] }
  0x38   :  { %601 = vmatpush.bf16.msrb.mxu1 %v754_v15  ;;  %v858_v14 = vor.u32 %v957_v27, %v855_v29  ;;  %v847_v39 = vld [vmem:[#allocation8 + $0x108] sm:$0xf0]  ;;  %v727_v43 = vld [vmem:[#allocation8 + $0x18] sm:$0xf0]  ;;  %v923_v45 = vld [vmem:[#allocation8 + $0x4] sm:$0xf] }
  0x39   :  { %553 = vmatpush.bf16.msrb.mxu2 %v718_v33  ;;  %577 = vmatpush.bf16.msra.mxu0 %v862_v51  ;;  %v971_v33 = vld [vmem:[#allocation8 + $0x184] sm:$0xf] }
  0x3a   :  { %566 = vmatpush.bf16.msrb.mxu3 %v782_v34  ;;  %v911_v34 = vld [vmem:[#allocation8 + $0x188] sm:$0xf0]  ;;  %v650_v26 = vld [vmem:[%s1179_s4] sm:$0x3] }
  0x3c   :  { %602 = vmatpush.bf16.msrb.mxu1 %v746_v24 }
  0x3d   :  { %611 = vmatpush.bf16.msra.mxu2 %v842_v35  ;;  %578 = vmatpush.bf16.msra.mxu0 %v854_v0  ;;  %v939_v35 = vld [vmem:[#allocation8 + $0x84] sm:$0xf] }
  0x3e   :  { %624 = vmatpush.bf16.msra.mxu3 %v906_v36  ;;  %v914_v36 = vor.u32 %v971_v33, %v911_v34  ;;  %v786_v40 = vor.u32 %v939_v35, %v783_v37  ;;  %v653_v34 = vperm.slane %v650_v26, 1 }
  0x40   :  { %603 = vmatpush.bf16.msrb.mxu1 %v738_v32 }
  0x41   :  { %612 = vmatpush.bf16.msra.mxu2 %v834_v41  ;;  %579 = vmatpush.bf16.msra.mxu0 %v846_v12  ;;  %v850_v41 = vor.u32 %v955_v38, %v847_v39 }
  0x42   :  { %625 = vmatpush.bf16.msra.mxu3 %v898_v42  ;;  %v925_v42 = vld [vmem:[#allocation8 + $0x14] sm:$0xf] }
  0x43   :  { %v730_v44 = vor.u32 %v925_v42, %v727_v43 }
  0x45   :  { %613 = vmatpush.bf16.msra.mxu2 %v826_v46  ;;  %644 = vmatpush.bf16.msrb.mxu0 %v914_v36  ;;  %v719_v46 = vld [vmem:[#allocation8 + $0x8] sm:$0xf0] }
  0x46   :  { %626 = vmatpush.bf16.msra.mxu3 %v890_v48  ;;  %604 = vmatpush.bf16.msrb.mxu1 %v730_v44  ;;  %v722_v47 = vor.u32 %v923_v45, %v719_v46  ;;  %v220_v48 = vld [vmem:[#allocation7] sm:$0xf] }
  0x47   :  { %v222_v49 = vperm.slane %v220_v48, 0  ;;  %v223_v50 = vperm.slane %v220_v48, 1  ;;  %v224_v57 = vperm.slane %v220_v48, 2  ;;  %v225_v59 = vperm.slane %v220_v48, 3 }
  0x49   :  { %614 = vmatpush.bf16.msra.mxu2 %v818_v58 }
  0x4a   :  { %627 = vmatpush.bf16.msra.mxu3 %v882_v60  ;;  %605 = vmatpush.bf16.msrb.mxu1 %v722_v47 }
  0x4d   :  { %615 = vmatpush.bf16.msra.mxu2 %v810_v5 }
  0x4e   :  { %628 = vmatpush.bf16.msra.mxu3 %v874_v8 }
  0x51   :  { %616 = vmatpush.bf16.msra.mxu2 %v802_v19 }
  0x52   :  { %629 = vmatpush.bf16.msra.mxu3 %v866_v21 }
  0x55   :  { %617 = vmatpush.bf16.msra.mxu2 %v794_v28 }
  0x56   :  { %630 = vmatpush.bf16.msra.mxu3 %v858_v14  ;;  %v652_v14 = vperm.slane %v650_v26, 0 }
  0x59   :  { %618 = vmatpush.bf16.msra.mxu2 %v786_v40  ;;  %v660_v40 = vld [vmem:[%s1180_s5] sm:$0x3] }
  0x5a   :  { %631 = vmatpush.bf16.msra.mxu3 %v850_v41  ;;  %v663_v43 = vperm.slane %v660_v40, 1  ;;  %v662_v45 = vperm.slane %v660_v40, 0 }
  0x98   :  { %v151_v51 = vpop.f32.mrf.mxu0  ;;  %v164_v53 = vpop.f32.mrf.mxu1 }
  0x99   :  { %v230_v52 = vadd.f32 %v222_v49, %v151_v51  ;;  %v231_v54 = vadd.f32 %v223_v50, %v164_v53  ;;  %v674_v51 = vstv %s1181_s6 }
  0x9b   :  { %v234_v55 = vmax.f32 %v230_v52, 0.0  ;;  %v235_v56 = vmax.f32 %v231_v54, 0.0 }
  0x9d   :  { %v238_v58 = vpack.c.bf16 %v234_v55, %v234_v55  ;;  %v239_v60 = vpack.c.bf16 %v235_v56, %v235_v56 }
  0x9f   :  { %v177_v61 = vpop.f32.mrf.mxu2  ;;  %554 = vmatmul.bf16.vlgmr.msrb.gmra.mxu2 %v238_v58  ;;  %567 = vmatmul.bf16.vlgmr.msrb.gmra.mxu3 %v239_v60 }
  0xa0   :  { %v232_v62 = vadd.f32 %v224_v57, %v177_v61  ;;  %v190_v63 = vpop.f32.mrf.mxu3  ;;  %v153_v0 = vpop.f32.mrf.mxu0 }
  0xa1   :  { %v233_v1 = vadd.f32 %v225_v59, %v190_v63  ;;  %v166_v2 = vpop.f32.mrf.mxu1 }
  0xa2   :  { %v236_v3 = vmax.f32 %v232_v62, 0.0 }
  0xa3   :  { %v237_v4 = vmax.f32 %v233_v1, 0.0 }
  0xa4   :  { %v240_v5 = vpack.c.bf16 %v236_v3, %v236_v3 }
  0xa5   :  { %v241_v6 = vpack.c.bf16 %v237_v4, %v237_v4 }
  0xa6   :  { %580 = vmatmul.bf16.vlgmr.msra.gmra.mxu0 %v240_v5 }
  0xa7   :  { %915 = vmatmul.msk.bf16.vlgmr.msra.gmra.mxu1 %vm542_vm2, %v241_v6  ;;  %v179_v7 = vpop.f32.mrf.mxu2 }
  0xa8   :  { %v192_v8 = vpop.f32.mrf.mxu3  ;;  %v203_v9 = vpop.f32.mrf.mxu0 }
  0xa9   :  { %v216_v10 = vpop.f32.mrf.mxu1 }
  0xaf   :  { %619 = vmatmul.bf16.vlgmr.msra.gmra.mxu2 %v239_v60  ;;  %632 = vmatmul.bf16.vlgmr.msra.gmra.mxu3 %v240_v5 }
  0xb0   :  { %v205_v11 = vpop.f32.mrf.mxu0 }
  0xb1   :  { %v218_v12 = vpop.f32.mrf.mxu1 }
  0xb6   :  { %916 = vmatmul.msk.bf16.vlgmr.msrb.gmra.mxu0 %vm542_vm2, %v241_v6 }
  0xb7   :  { %606 = vmatmul.bf16.vlgmr.msrb.gmra.mxu1 %v238_v58 }
 0x122   :  { %v555_v13 = vpop.f32.mrf.mxu2  ;;  %v568_v15 = vpop.f32.mrf.mxu3 }
 0x123   :  { %v581_v16 = vpop.f32.mrf.mxu0  ;;  %v556_v18 = vadd.f32 %v555_v13, %v203_v9 }
 0x124   :  { %v594_v17 = vpop.f32.mrf.mxu1 }
 0x125   :  { %v569_v23 = vadd.f32 %v568_v15, %v556_v18 }
 0x127   :  { %v582_v24 = vadd.f32 %v581_v16, %v569_v23 }
 0x129   :  { %v595_v31 = vadd.f32 %v594_v17, %v582_v24 }
 0x12a   :  { %v557_v19 = vpop.f32.mrf.mxu2  ;;  %v570_v20 = vpop.f32.mrf.mxu3 }
 0x12b   :  { %v583_v21 = vpop.f32.mrf.mxu0  ;;  %v656_v35 = vadd.f32 %v652_v14, %v595_v31 }
 0x12c   :  { %v596_v22 = vpop.f32.mrf.mxu1 }
 0x12d   :  { %v658_v44 = vmax.f32 %v656_v35, 0.0 }
 0x12f   :  { %v666_v48 = vmul.f32 %v662_v45, %v658_v44 }
 0x132   :  { %v620_v25 = vpop.f32.mrf.mxu2  ;;  %v633_v27 = vpop.f32.mrf.mxu3 }
 0x133   :  { %v646_v28 = vpop.f32.mrf.mxu0 }
 0x134   :  { %v607_v29 = vpop.f32.mrf.mxu1 }
 0x135   :  { %v608_v30 = vadd.f32 %v607_v29, %v216_v10 }
 0x137   :  { %v621_v32 = vadd.f32 %v620_v25, %v608_v30 }
 0x139   :  { %v634_v33 = vadd.f32 %v633_v27, %v621_v32 }
 0x13a   :  { %v622_v36 = vpop.f32.mrf.mxu2  ;;  %v635_v38 = vpop.f32.mrf.mxu3 }
 0x13b   :  { %v647_v37 = vadd.f32 %v646_v28, %v634_v33  ;;  %v648_v39 = vpop.f32.mrf.mxu0 }
 0x13c   :  { %v609_v41 = vpop.f32.mrf.mxu1 }
 0x13d   :  { %v657_v42 = vadd.f32 %v653_v34, %v647_v37 }
 0x13f   :  { %v659_v46 = vmax.f32 %v657_v42, 0.0 }
 0x141   :  { %v667_v47 = vmul.f32 %v663_v43, %v659_v46 }
 0x143   :  { %v669_v49 = vsel %vm668_vm3, %v667_v47, 0.0 }
 0x144   :  { %v670_v50 = vadd.f32 %v669_v49, %v666_v48 }
 0x146   :  { %671 = vadd.xlane.f32.xlu0 %v670_v50 }
 0x1b9   :  { %v672_v52 = vpop.xlane.xlu0 %671 }
 0x1ba   :  { %v675_v53 = vadd.f32 %v674_v51, %v672_v52 }
 0x1bc   :  { %677 = vst.msk [vmem:[%s1182_s7] sm:$0xff] %vm676_vm4, %v675_v53 }
 0x1bd   :  { %682 = vsyncpa [#allocation4], 1 }
 0x1be   :  { %683 = vsyncpa [#allocation6], 1 }
 0x1bf   :  { %684 = vsyncpa [#allocation9], 1 }

</bundles_post_ra>
